<compile_context>
chip_gen: v7x
topology: tpu7x:2x2x1
jax: 0.10.0
libtpu: 0.0.40
codegen_flags: <defaults>
</compile_context>

<pallas_src>
import functools

import jax
import jax.numpy as jnp
from jax import lax
from jax.experimental import pallas as pl
from jax.experimental.pallas import tpu as pltpu


def _round_up(x: int, m: int) -> int:
    return ((x + m - 1) // m) * m


def _cdiv(a: int, b: int) -> int:
    return (a + b - 1) // b


def zero_one_loss_kernel(in_ref, tgt_ref, out_ref, acc_ref, *, n_rows, tm):
    k = pl.program_id(1)  # reduction (batch) axis, innermost

    @pl.when(k == 0)
    def _init():
        acc_ref[...] = jnp.zeros_like(acc_ref)

    # Direct compare on the stored dtype (no int32 upcast), fused chain.
    eq = in_ref[...] == tgt_ref[...]                       # (tm, tn) bool
    tn = eq.shape[-1]

    if n_rows % tm != 0:
        # Ragged batch: rows past the true N (only on the last k tile) hold
        # stale VMEM data — mask them so they contribute zero matches.
        row = k * tm + lax.broadcasted_iota(jnp.int32, (tm, tn), 0)
        eq = jnp.logical_and(eq, row < n_rows)

    # VPU-only partial accumulation: split sublanes (tm -> tm//8 x 8), sum the
    # leading axis (aligned vreg adds, no XLU), add into the (8, tn) scratch.
    acc_ref[...] += jnp.sum(eq.astype(jnp.float32).reshape(tm // 8, 8, tn), axis=0)

    @pl.when(k == pl.num_programs(1) - 1)
    def _finalize():
        # One cross-sublane (8 -> 1) reduce per output tile, then 1 - mean.
        total = jnp.sum(acc_ref[...], axis=0, keepdims=True)  # (1, tn)
        out_ref[...] = 1.0 - total * (1.0 / n_rows)


def zero_one_loss(inputs, target, *, tm=512, tn=2048):
    """inputs, target: label arrays of shape (N, D). Returns float32 (D,).

    Reads the arrays in their stored dtype (no casts, no padding copies).
    """
    assert inputs.shape == target.shape, "inputs/target shape mismatch"
    N, D = inputs.shape

    # Lane tile: multiple of 128, at most the lane-rounded D.
    d_lanes = _round_up(D, 128)
    tn = _round_up(min(tn, d_lanes), 128)
    # v7x megacore: expose >= 2 tiles on the parallel (D) axis when D allows.
    while tn > 128 and d_lanes >= 256 and _cdiv(d_lanes, tn) < 2:
        tn = _round_up(tn // 2, 128)

    # Sublane tile: multiple of 8, at most the sublane-rounded N.
    tm = _round_up(min(tm, _round_up(N, 8)), 8)

    grid = (_cdiv(D, tn), _cdiv(N, tm))  # (D tiles [parallel], N tiles [arbitrary])
    d_out = grid[0] * tn                 # lane-dense padded output; sliced after

    itemsize = jnp.dtype(inputs.dtype).itemsize
    cost = pl.CostEstimate(
        flops=2 * N * D,
        transcendentals=0,
        bytes_accessed=2 * N * D * itemsize + 4 * d_out,
    )

    kernel = functools.partial(zero_one_loss_kernel, n_rows=N, tm=tm)

    out = pl.pallas_call(
        kernel,
        out_shape=jax.ShapeDtypeStruct((1, d_out), jnp.float32),
        grid_spec=pltpu.PrefetchScalarGridSpec(
            num_scalar_prefetch=0,
            grid=grid,
            in_specs=[
                pl.BlockSpec((tm, tn), lambda j, k: (k, j)),
                pl.BlockSpec((tm, tn), lambda j, k: (k, j)),
            ],
            # Same output block index across k -> output tile resident across
            # the whole reduction (accumulator pattern).
            out_specs=pl.BlockSpec((1, tn), lambda j, k: (0, j)),
            scratch_shapes=[pltpu.VMEM((8, tn), jnp.float32)],
        ),
        compiler_params=pltpu.CompilerParams(
            dimension_semantics=("parallel", "arbitrary"),
            vmem_limit_bytes=48 * 1024 * 1024,
        ),
        cost_estimate=cost,
    )(inputs, target)
    return out[0, :D]


if __name__ == "__main__":
    # Module __init__ params (kind / num_classes) do not affect the forward pass.
    num_classes = 2
    # Small, deliberately ragged shapes: N=200 (not a tile multiple), D=320
    # (not a multiple of 128) so ragged-N masking and ragged-D boundary blocks
    # are exercised; tm=64, tn=128 gives a (3, 4) grid so init / accumulate /
    # finalize all run.
    N, D = 200, 320

    key = jax.random.PRNGKey(0)
    k1, k2 = jax.random.split(key)
    inputs = jax.random.randint(k1, (N, D), 0, num_classes, dtype=jnp.int32)
    target = jax.random.randint(k2, (N, D), 0, num_classes, dtype=jnp.int32)

    # Pure-JAX reference of the PyTorch semantics.
    ref = 1.0 - jnp.mean((inputs == target).astype(jnp.float32), axis=0)

    # Small explicit tiles (ragged path) ...
    loss_small = zero_one_loss(inputs, target, tm=64, tn=128)
    jax.block_until_ready(loss_small)
    assert loss_small.shape == (D,), f"bad output shape {loss_small.shape}"
    assert jnp.allclose(loss_small, ref, atol=1e-6), "mismatch vs reference (small tiles)"

    # ... and the default (large-tile) path, clamped to these small shapes.
    loss_default = zero_one_loss(inputs, target)
    jax.block_until_ready(loss_default)
    assert loss_default.shape == (D,), f"bad output shape {loss_default.shape}"
    assert jnp.allclose(loss_default, ref, atol=1e-6), "mismatch vs reference (default tiles)"

    print("KERNEL_OK")
</pallas_src>

<mosaic_0001>
module attributes {stable_mosaic.version = 11 : i64} {
  func.func @zero_one_loss_kernel(%arg0: i32, %arg1: i32, %arg2: memref<64x128xi32, #tpu.memory_space<vmem>>, %arg3: memref<64x128xi32, #tpu.memory_space<vmem>>, %arg4: memref<1x128xf32, #tpu.memory_space<vmem>>, %arg5: memref<8x128xf32, #tpu.memory_space<vmem>>) attributes {dimension_semantics = [#tpu.dimension_semantics<parallel>, #tpu.dimension_semantics<arbitrary>], iteration_bounds = array<i64: 3, 4>, scalar_prefetch = 0 : i64, scratch_operands = 1 : i64, tpu.core_type = #tpu.core_type<tc>, window_params = [{transform_indices = @transform_0, window_bounds = array<i64: 64, 128>}, {transform_indices = @transform_1, window_bounds = array<i64: 64, 128>}, {transform_indices = @transform_2, window_bounds = array<i64: 1, 128>}]} {
    %c0_i32 = arith.constant 0 : i32
    %0 = arith.cmpi eq, %arg1, %c0_i32 : i32
    %1 = arith.extui %0 : i1 to i32
    %c0_i32_0 = arith.constant 0 : i32
    %2 = arith.cmpi ne, %1, %c0_i32_0 : i32
    scf.if %2 {
      %cst_9 = arith.constant 0.000000e+00 : f32
      %23 = vector.broadcast %cst_9 : f32 to vector<8x128xf32>
      %c0_10 = arith.constant 0 : index
      %c0_11 = arith.constant 0 : index
      %24 = vector.load %arg5[%c0_10, %c0_11] : memref<8x128xf32, #tpu.memory_space<vmem>>, vector<8x128xf32>
      tpu.vector_store %arg5[%c0_10, %c0_11], %23 {strides = array<i32>} : memref<8x128xf32, #tpu.memory_space<vmem>>, vector<8x128xf32>,
    } else {
    }
    %c0 = arith.constant 0 : index
    %c0_1 = arith.constant 0 : index
    %3 = vector.load %arg2[%c0, %c0_1] : memref<64x128xi32, #tpu.memory_space<vmem>>, vector<64x128xi32>
    %c0_2 = arith.constant 0 : index
    %c0_3 = arith.constant 0 : index
    %4 = vector.load %arg3[%c0_2, %c0_3] : memref<64x128xi32, #tpu.memory_space<vmem>>, vector<64x128xi32>
    %5 = arith.cmpi eq, %3, %4 : vector<64x128xi32>
    %c64_i32 = arith.constant 64 : i32
    %6 = arith.muli %arg1, %c64_i32 : i32
    %7 = tpu.iota {dimensions = array<i32: 0>} : vector<64x128xi32>
    %8 = vector.broadcast %6 : i32 to vector<64x128xi32>
    %9 = arith.addi %8, %7 : vector<64x128xi32>
    %c200_i32 = arith.constant 200 : i32
    %10 = vector.broadcast %c200_i32 : i32 to vector<64x128xi32>
    %11 = arith.cmpi slt, %9, %10 : vector<64x128xi32>
    %12 = arith.andi %5, %11 : vector<64x128xi1>
    %c0_4 = arith.constant 0 : index
    %c0_5 = arith.constant 0 : index
    %13 = vector.load %arg5[%c0_4, %c0_5] : memref<8x128xf32, #tpu.memory_space<vmem>>, vector<8x128xf32>
    %14 = arith.extui %12 : vector<64x128xi1> to vector<64x128xi32>
    %15 = arith.sitofp %14 : vector<64x128xi32> to vector<64x128xf32>
    %16 = vector.shape_cast %15 : vector<64x128xf32> to vector<8x8x128xf32>
    %cst = arith.constant dense<0.000000e+00> : vector<8x128xf32>
    %17 = vector.multi_reduction <add>, %16, %cst [0] : vector<8x8x128xf32> to vector<8x128xf32>
    %18 = arith.addf %13, %17 : vector<8x128xf32>
    %c0_6 = arith.constant 0 : index
    %c0_7 = arith.constant 0 : index
    %19 = vector.load %arg5[%c0_6, %c0_7] : memref<8x128xf32, #tpu.memory_space<vmem>>, vector<8x128xf32>
    tpu.vector_store %arg5[%c0_6, %c0_7], %18 {strides = array<i32>} : memref<8x128xf32, #tpu.memory_space<vmem>>, vector<8x128xf32>,
    %c3_i32 = arith.constant 3 : i32
    %20 = arith.cmpi eq, %arg1, %c3_i32 : i32
    %21 = arith.extui %20 : i1 to i32
    %c0_i32_8 = arith.constant 0 : i32
    %22 = arith.cmpi ne, %21, %c0_i32_8 : i32
    scf.if %22 {
      %c0_9 = arith.constant 0 : index
      %c0_10 = arith.constant 0 : index
      %23 = vector.load %arg5[%c0_9, %c0_10] : memref<8x128xf32, #tpu.memory_space<vmem>>, vector<8x128xf32>
      %cst_11 = arith.constant dense<0.000000e+00> : vector<128xf32>
      %24 = vector.multi_reduction <add>, %23, %cst_11 [0] : vector<8x128xf32> to vector<128xf32>
      %25 = vector.shape_cast %24 : vector<128xf32> to vector<1x128xf32>
      %cst_12 = arith.constant 5.000000e-03 : f32
      %26 = vector.broadcast %cst_12 : f32 to vector<1x128xf32>
      %27 = arith.mulf %25, %26 : vector<1x128xf32>
      %cst_13 = arith.constant 1.000000e+00 : f32
      %28 = vector.broadcast %cst_13 : f32 to vector<1x128xf32>
      %29 = arith.subf %28, %27 : vector<1x128xf32>
      %c0_14 = arith.constant 0 : index
      %c0_15 = arith.constant 0 : index
      %30 = vector.load %arg4[%c0_14, %c0_15] : memref<1x128xf32, #tpu.memory_space<vmem>>, vector<1x128xf32>
      tpu.vector_store %arg4[%c0_14, %c0_15], %29 {strides = array<i32>} : memref<1x128xf32, #tpu.memory_space<vmem>>, vector<1x128xf32>,
    } else {
    }
    return
  }
  func.func @transform_0(%arg0: i32, %arg1: i32) -> (i32, i32) {
    %c0_i32 = arith.constant 0 : i32
    return %arg1, %arg0 : i32, i32
  }
  func.func @transform_1(%arg0: i32, %arg1: i32) -> (i32, i32) {
    %c0_i32 = arith.constant 0 : i32
    return %arg1, %arg0 : i32, i32
  }
  func.func @transform_2(%arg0: i32, %arg1: i32) -> (i32, i32) {
    %c0_i32 = arith.constant 0 : i32
    %c0_i32_0 = arith.constant 0 : i32
    return %c0_i32, %arg0 : i32, i32
  }
}

</mosaic_0001>

<bundles_post_ra>
// kernel: tpu_custom_call.1
= control target key start
LH: loop header
LB: loop body
LE: loop exit
PB: predicated region body
PF: predicated region fallthrough
CT: control target
= control target key end

     0   :  { %s1117_s0 = inlined_call_operand.hbm [shape: s32[200,320], index: 0, kind: input, shape index: {}]   ;;  %s1118_s1 = inlined_call_operand.hbm [shape: s32[200,320], index: 1, kind: input, shape index: {}]   ;;  %s1119_s2 = inlined_call_operand.hbm [shape: f32[1,384], index: 2, kind: output, shape index: {}]  }
   0x1   :  { %1123 = sst [smem:[#allocation15_spill]] %s1117_s0 }
   0x2   :  { %7 = vsyncpa [#allocation4], 0 }
   0x3   :  { %9 = vsyncpa [#allocation4 + $0x1], 0 }
   0x4   :  { %10 = vsyncpa [#allocation7], 0 }
   0x5   :  { %12 = vsyncpa [#allocation7 + $0x1], 0 }
   0x6   :  { %13 = vsyncpa [#allocation5], 0 }
   0x7   :  { %15 = vsyncpa [#allocation5 + $0x1], 0  ;;  %s818_s9 = smov 0   ;;  %s820_s10 = smov 0  }
   0x8   :  { %s822_s11 = smov 0   ;;  %s824_s12 = smov 0  }
   0x9   :  { %s826_s13 = smov 0   ;;  %s828_s14 = smov 0  }
   0xa   :  { %s830_s15 = smov 0   ;;  %s832_s16 = smov 0  }
   0xb   :  { %s834_s17 = smov 0   ;;  %s836_s18 = smov 0  }
   0xc   :  { %s838_s19 = smov 0  }
   0xd LB: > { %s464_s20 = sadd.s32 4294967295, %s790_s19   ;;  %s465_s21 = sadd.s32 4294967294, %s790_s19   ;;  %s790_s19 = sphi %s838_s19, %s21_s19   ;;  %s786_s18 = sphi %s836_s18, %s1146_s18   ;;  %s782_s17 = sphi %s834_s17, %s1145_s17   ;;  %s778_s16 = sphi %s832_s16, %s1144_s16   ;;  %s774_s15 = sphi %s830_s15, %s1143_s15   ;;  %s770_s14 = sphi %s828_s14, %s1142_s14   ;;  %s766_s13 = sphi %s826_s13, %s1141_s13   ;;  %s762_s12 = sphi %s824_s12, %s1140_s12   ;;  %s758_s11 = sphi %s822_s11, %s1139_s11   ;;  %s754_s10 = sphi %s820_s10, %s1138_s10   ;;  %s750_s9 = sphi %s818_s9, %s1137_s9  }
   0xe   : > { %s30_s22 = sadd.s32 1, %s782_s17  ;;  %s33_s23 = sadd.s32 1, %s786_s18 }
   0xf   : > { %p31_p0 = scmp.ge.s32.totalorder %s30_s22, 4  ;;  %s42_s24 = sadd.s32 1, %s770_s14 }
  0x10   : > { %p49_p1 = scmp.ne.s32.totalorder %s770_s14, %s766_s13  ;;  %p50_p2 = scmp.eq.s32.totalorder %s790_s19, 0 }
  0x11   : > { %s1148_s22 = smov (%p31_p0, %s30_s22), 0  ;;  %s1150_s23 = smov (!%p31_p0, %s33_s23), %s786_s18 }
  0x12   : > { %1124 = sst [smem:[#allocation12_spill]] %s1148_s22  ;;  %s37_s25 = ssub.s32 %s782_s17, %s1148_s22 }
  0x13   : > { %p884_p3 = por %p50_p2, %p49_p1  ;;  %p35_p4 = scmp.ge.s32.totalorder %s1150_s23, 3 }
  0x14   : > { %p55_p5 = scmp.ne.s32.totalorder %s766_s13, %s762_s12  ;;  %p56_p6 = scmp.eq.s32.totalorder %s464_s20, 0 }
  0x15   : > { %s96_s27 = sadd.s32 1, %s758_s11  ;;  %s1152_s23 = smov (%p35_p4, %s1150_s23), 0 }
  0x16   : > { %1126 = sst [smem:[#allocation13_spill]] %s1152_s23  ;;  %p892_p7 = por %p56_p6, %p55_p5 }
  0x17   : > { %p106_p8 = scmp.ne.s32.totalorder %s758_s11, %s754_s10  ;;  %s38_s29 = ssub.s32 %s786_s18, %s1152_s23 }
  0x18   : > { %p107_p9 = scmp.eq.s32.totalorder %s464_s20, 11  ;;  %s39_s30 = sor.u32 %s38_s29, %s37_s25 }
  0x19   : > { %p94_p10 = scmp.eq.s32.totalorder %s38_s29, 0  ;;  %p40_p11 = scmp.eq.s32.totalorder %s39_s30, 0 }
  0x1a   : > { %p900_p12 = por %p107_p9, %p106_p8  ;;  %p112_p13 = scmp.ne.s32.totalorder %s754_s10, %s750_s9 }
  0x1b   : > { %s905_s4 = scalar_select %p94_p10, %s758_s11, %s96_s27  }
  0x1c   : > { %s1128_s3 = scalar_select %p900_p12, 1, 0 }
  0x1d   : > { %s908_s5 = scalar_select %p40_p11, %s770_s14, %s42_s24  }
  0x1e   : > { %p113_p0 = scmp.eq.s32.totalorder %s465_s21, 11  ;;  %p467_p2 = scmp.ge.s32.totalorder %s790_s19, 12 }
  0x1f   : > { %1129 = sst [smem:[#allocation14_spill]] %s908_s5 }
  0x20   : > { %p912_p1 = por %p113_p0, %p112_p13  ;;  %129 = sbr.rel (%p467_p2) target bundleno = 118 (0x76), region = 16 }
  0x22   : > { %s1130_s6 = scalar_select %p912_p1, 1, 0 }
  0x27   : > { %132 = sbr.rel (!%p884_p3) target bundleno = 80 (0x50), region = 20  ;;  %s133_s7 = sand.u32 (%p884_p3), 1, %s770_s14  }
  0x28   : > { %s469_s8 = sshll.u32 (%p884_p3), %s782_s17, 3  ;;  %s468_s12 = sshll.u32 (%p884_p3), %s133_s7, 6 }
  0x29   : > { %s139_s20 = ssub.s32 (%p884_p3), 25, %s469_s8  ;;  %s924_s25 = scalar_lea.sflag (%p884_p3), [#allocation4], %s133_s7 }
  0x2a   : > { %p140_p4 = scmp.lt.s32.totalorder (%p884_p3), %s139_s20, 8  ;;  %s137_s27 = scalar_lea.vmem (%p884_p3), [#allocation3], %s468_s12 }
  0x2e   : > { %s1154_s20 = smov (!%p140_p4, %s139_s20), 8 }
  0x2f   : > { %s921_s24 = sshll.u32 %s1154_s20, 7 }
  0x30   : > { %s144_s21 = ssub.s32 1024, %s921_s24 }
  0x31   : > { %145 = vsyncadd %s924_s25, %s144_s21  ;;  %p471_p5 = scmp.ne.s32.totalorder %s921_s24, 0  ;;  %s501_s29 = smul.u32 24, %s782_s17 }
  0x32   : > { %s152_s30 = sshll.u32 %s137_s27, 4  ;;  %s1131_s0 = sld [smem:[#allocation15_spill]]  ;;  %s930_s30 = int_to_ptr.vmem [resolvable:$true] %s152_s30 }
  0x33   : > { %s148_s8 = sadd.s32 %s786_s18, %s501_s29 }
  0x34   : > { %s473_s20 = sshll.u32 %s148_s8, 7 }
  0x38   : > { %s935_s7 = scalar_lea.hbm %s1131_s0, %s473_s20  ;;  %s612_s29 = scalar_lea.hbm %s1131_s0, 9600 }
  0x39   : > { %s608_s12 = scalar_lea.hbm %s935_s7, %s921_s24  ;;  %p613_p10 = scmp.lt.u32.totalorder %s935_s7, %s1131_s0 }
  0x3a   : > { %p609_p6 = scmp.ne.s32.totalorder %s935_s7, %s608_s12  ;;  %p614_p11 = scmp.lt.u32.totalorder %s612_s29, %s608_s12 }
  0x3b   : > { %p616_p0 = scmp.lt.u32.totalorder %s608_s12, %s935_s7 }
  0x3c   : > { %p610_p8 = pnand %p609_p6, %p471_p5  ;;  %p615_p13 = por %p614_p11, %p613_p10 }
  0x3e   : > { %p611_p9 = pneg %p610_p8  ;;  %p617_p2 = por %p616_p0, %p615_p13 }
  0x40   : > { %p618_p4 = pnand %p617_p2, %p611_p9 }
  0x42   : > { %621 = shalt.err (!%p618_p4)
}
  0x43   : > { %s622_s22 = scalar_lea.vmem %s930_s30, %s921_s24  ;;  %s792_s23 = smov [#allocation3]  }
  0x44   : > { %p623_p6 = scmp.ne.s32.totalorder %s930_s30, %s622_s22  ;;  %s626_s20 = sshll.u32 %s792_s23, 4  ;;  %s627_s20 = int_to_ptr.vmem [resolvable:$false] %s626_s20 }
  0x45   : > { %s628_s5 = scalar_lea.vmem %s627_s20, 2048  ;;  %p629_p12 = scmp.lt.s32.totalorder %s930_s30, %s627_s20 }
  0x46   : > { %p624_p8 = pnand %p623_p6, %p471_p5  ;;  %p630_p10 = scmp.lt.s32.totalorder %s628_s5, %s622_s22 }
  0x48   : > { %p625_p1 = pneg %p624_p8  ;;  %p631_p11 = por %p630_p10, %p629_p12 }
  0x4a   : > { %p632_p13 = pnand %p631_p11, %p625_p1 }
  0x4c   : > { %635 = shalt.err (!%p632_p13)
}
  0x4d   : > { %s793_s12 = smov 384   ;;  %s794_s21 = smov 128  }
  0x4e   : > { %s795_s27 = smov 8  }
  0x4f   : > { %158 = dma.hbm_to_vmem [thread:$0]  (%p471_p5), %s935_s7, %s921_s24, %s930_s30, %s924_s25, %s793_s12, %s794_s21, %s795_s27  }
  0x50 PF: > { %161 = sbr.rel (!%p884_p3) target bundleno = 118 (0x76), region = 24  ;;  %s162_s29 = sand.u32 (%p884_p3), 1, %s770_s14  }
  0x51   : > { %s477_s8 = sshll.u32 (%p884_p3), %s782_s17, 3  ;;  %s476_s22 = sshll.u32 (%p884_p3), %s162_s29, 6 }
  0x52   : > { %s168_s23 = ssub.s32 (%p884_p3), 25, %s477_s8  ;;  %s969_s0 = scalar_lea.sflag (%p884_p3), [#allocation7], %s162_s29 }
  0x53   : > { %p169_p12 = scmp.lt.s32.totalorder (%p884_p3), %s168_s23, 8  ;;  %s166_s24 = scalar_lea.vmem (%p884_p3), [#allocation6], %s476_s22 }
  0x57   : > { %s1156_s23 = smov (!%p169_p12, %s168_s23), 8 }
  0x58   : > { %s966_s20 = sshll.u32 %s1156_s23, 7 }
  0x59   : > { %s173_s5 = ssub.s32 1024, %s966_s20 }
  0x5a   : > { %174 = vsyncadd %s969_s0, %s173_s5  ;;  %p479_p3 = scmp.ne.s32.totalorder %s966_s20, 0  ;;  %s502_s26 = smul.u32 24, %s782_s17 }
  0x5b   : > { %s181_s25 = sshll.u32 %s166_s24, 4  ;;  %s640_s23 = scalar_lea.hbm %s1118_s1, 9600  ;;  %s975_s25 = int_to_ptr.vmem [resolvable:$true] %s181_s25 }
  0x5c   : > { %s177_s30 = sadd.s32 %s786_s18, %s502_s26 }
  0x5d   : > { %s481_s7 = sshll.u32 %s177_s30, 7 }
  0x5e   : > { %s980_s27 = scalar_lea.hbm %s1118_s1, %s481_s7 }
  0x5f   : > { %s636_s29 = scalar_lea.hbm %s980_s27, %s966_s20  ;;  %p641_p0 = scmp.lt.u32.totalorder %s980_s27, %s1118_s1 }
  0x60   : > { %p637_p1 = scmp.ne.s32.totalorder %s980_s27, %s636_s29  ;;  %p642_p2 = scmp.lt.u32.totalorder %s640_s23, %s636_s29 }
  0x61   : > { %p644_p6 = scmp.lt.u32.totalorder %s636_s29, %s980_s27 }
  0x62   : > { %p638_p5 = pnand %p637_p1, %p479_p3  ;;  %p643_p4 = por %p642_p2, %p641_p0 }
  0x64   : > { %p639_p9 = pneg %p638_p5  ;;  %p645_p8 = por %p644_p6, %p643_p4 }
  0x66   : > { %p646_p10 = pnand %p645_p8, %p639_p9 }
  0x68   : > { %649 = shalt.err (!%p646_p10)
}
  0x69   : > { %s650_s26 = scalar_lea.vmem %s975_s25, %s966_s20  ;;  %s796_s30 = smov [#allocation6]  }
  0x6a   : > { %p651_p11 = scmp.ne.s32.totalorder %s975_s25, %s650_s26  ;;  %s654_s7 = sshll.u32 %s796_s30, 4  ;;  %s655_s7 = int_to_ptr.vmem [resolvable:$false] %s654_s7 }
  0x6b   : > { %s656_s12 = scalar_lea.vmem %s655_s7, 2048  ;;  %p657_p1 = scmp.lt.s32.totalorder %s975_s25, %s655_s7 }
  0x6c   : > { %p652_p13 = pnand %p651_p11, %p479_p3  ;;  %p658_p5 = scmp.lt.s32.totalorder %s656_s12, %s650_s26 }
  0x6e   : > { %p653_p12 = pneg %p652_p13  ;;  %p659_p0 = por %p658_p5, %p657_p1 }
  0x70   : > { %p660_p2 = pnand %p659_p0, %p653_p12 }
  0x72   : > { %663 = shalt.err (!%p660_p2)
}
  0x73   : > { %s797_s21 = smov 384   ;;  %s798_s29 = smov 128  }
  0x74   : > { %s799_s8 = smov 8  }
  0x75   : > { %187 = dma.hbm_to_vmem [thread:$0]  (%p479_p3), %s980_s27, %s966_s20, %s975_s25, %s969_s0, %s797_s21, %s798_s29, %s799_s8  }
  0x76 PF: > { %p484_p9 = scmp.ge.s32.totalorder %s790_s19, 1  ;;  %p189_p4 = scmp.lt.s32.totalorder %s790_s19, 13 }
  0x78   : > { %p190_p6 = pnand %p484_p9, %p189_p4 }
  0x79   : > { %s195_s22 = sand.u32 (!%p190_p6), 1, %s766_s13  }
  0x7a   : > { %193 = sbr.rel (%p190_p6) target bundleno = 218 (0xda), region = 28  ;;  %s485_s23 = sshll.u32 (!%p190_p6), %s195_s22, 6 }
  0x7b   : > { %s196_s5 = scalar_lea.sflag (!%p190_p6), [#allocation4], %s195_s22  ;;  %s1010_s24 = scalar_lea.vmem (!%p190_p6), [#allocation3], %s485_s23 }
  0x81   : > { %737 = dma.done.wait (%p892_p7), %s196_s5, 1024  }
  0x82   : > { %739 = vsyncadd (%p892_p7), %s196_s5, 4294966272  ;;  %s205_s0 = scalar_lea.sflag [#allocation7], %s195_s22  ;;  %s1016_s20 = scalar_lea.vmem [#allocation6], %s485_s23 }
  0x83   : > { %741 = dma.done.wait (%p892_p7), %s205_s0, 1024  }
  0x84   : > { %743 = vsyncadd (%p892_p7), %s205_s0, 4294966272  ;;  %s231_s25 = sand.u32 1, %s754_s10   ;;  %p487_p3 = scmp.ne.s32.totalorder %s774_s15, 0 }
  0x85   : > { %s1025_s27 = scalar_lea.vmem [#allocation8], %s231_s25  ;;  %v800_v0 = vmov (!%p487_p3), 0.0  }
  0x86   : > { %246 = sbr.rel (%p487_p3) target bundleno = 141 (0x8d), region = 40  ;;  %247 = vst [vmem:[#allocation2] sm:$0xff] (!%p487_p3), %v800_v0 }
  0x8d PF: > { %v273_v1 = vlaneseq  ;;  %s488_s28 = sshll.u32 %s774_s15, 6  ;;  %v248_v2 = vld [vmem:[%s1010_s24] sm:$0xff]  ;;  %v249_v5 = vld [vmem:[%s1010_s24 + $0x8] sm:$0xff]  ;;  %v250_v10 = vld [vmem:[%s1010_s24 + $0x10] sm:$0xff]  ;;  %v801_v32 = vmov 0.0   ;;  %p497_p7 = scmp.ne.s32.totalorder %s774_s15, 3 }
  0x8e   : > { %v256_v3 = vld [vmem:[%s1016_s20] sm:$0xff]  ;;  %v257_v6 = vld [vmem:[%s1016_s20 + $0x8] sm:$0xff]  ;;  %v282_v8 = vstv %s488_s28  ;;  %v258_v11 = vld [vmem:[%s1016_s20 + $0x10] sm:$0xff] }
  0x8f   : > { %v274_v4 = vshrl.u32 %v273_v1, 7  ;;  %vm264_vm0 = vcmp.eq.s32.totalorder %v248_v2, %v256_v3  ;;  %vm265_vm1 = vcmp.eq.s32.totalorder %v249_v5, %v257_v6  ;;  %v251_v15 = vld [vmem:[%s1010_s24 + $0x18] sm:$0xff]  ;;  %v252_v21 = vld [vmem:[%s1010_s24 + $0x20] sm:$0xff]  ;;  %v253_v27 = vld [vmem:[%s1010_s24 + $0x28] sm:$0xff]  ;;  %vm266_vm2 = vcmp.eq.s32.totalorder %v250_v10, %v258_v11 }
  0x90   : > { %v259_v16 = vld [vmem:[%s1016_s20 + $0x18] sm:$0xff]  ;;  %v260_v22 = vld [vmem:[%s1016_s20 + $0x20] sm:$0xff]  ;;  %v261_v28 = vld [vmem:[%s1016_s20 + $0x28] sm:$0xff] }
  0x91   : > { %v275_v7 = vadd.s32 8, %v274_v4  ;;  %v276_v9 = vadd.s32 16, %v274_v4  ;;  %v277_v12 = vadd.s32 24, %v274_v4  ;;  %v278_v13 = vadd.s32 32, %v274_v4  ;;  %v254_v30 = vld [vmem:[%s1010_s24 + $0x30] sm:$0xff]  ;;  %v255_v36 = vld [vmem:[%s1010_s24 + $0x38] sm:$0xff] }
  0x92   : > { %v279_v14 = vadd.s32 40, %v274_v4  ;;  %v280_v17 = vadd.s32 48, %v274_v4  ;;  %v281_v18 = vadd.s32 56, %v274_v4  ;;  %v283_v19 = vadd.s32 %v282_v8, %v274_v4  ;;  %v262_v31 = vld [vmem:[%s1016_s20 + $0x30] sm:$0xff]  ;;  %v263_v37 = vld [vmem:[%s1016_s20 + $0x38] sm:$0xff] }
  0x93   : > { %v284_v20 = vadd.s32 %v282_v8, %v275_v7  ;;  %v285_v23 = vadd.s32 %v282_v8, %v276_v9  ;;  %v286_v24 = vadd.s32 %v282_v8, %v277_v12  ;;  %v287_v25 = vadd.s32 %v282_v8, %v278_v13  ;;  %v307_v50 = vld [vmem:[#allocation2] sm:$0xff] }
  0x94   : > { %v288_v26 = vadd.s32 %v282_v8, %v279_v14  ;;  %vm291_vm3 = vcmp.lt.s32.totalorder %v283_v19, 200  ;;  %vm267_vm5 = vcmp.eq.s32.totalorder %v251_v15, %v259_v16  ;;  %v289_v29 = vadd.s32 %v282_v8, %v280_v17 }
  0x95   : > { %vm292_vm4 = vcmp.lt.s32.totalorder %v284_v20, 200  ;;  %vm293_vm6 = vcmp.lt.s32.totalorder %v285_v23, 200  ;;  %vm294_vm7 = vcmp.lt.s32.totalorder %v286_v24, 200  ;;  %vm299_vm8 = vmand %vm264_vm0, %vm291_vm3  ;;  %vm268_vm9 = vcmp.eq.s32.totalorder %v252_v21, %v260_v22 }
  0x96   : > { %vm295_vm10 = vcmp.lt.s32.totalorder %v287_v25, 200  ;;  %vm300_vm11 = vmand %vm265_vm1, %vm292_vm4  ;;  %v489_v33 = vsel %vm299_vm8, 1.0, %v801_v32  ;;  %vm269_vm12 = vcmp.eq.s32.totalorder %v253_v27, %v261_v28  ;;  %v290_v34 = vadd.s32 %v282_v8, %v281_v18 }
  0x97   : > { %vm296_vm13 = vcmp.lt.s32.totalorder %v288_v26, 200  ;;  %vm301_vm14 = vmand %vm266_vm2, %vm293_vm6  ;;  %v490_v35 = vsel %vm300_vm11, 1.0, %v801_v32  ;;  %vm270_vm0 = vcmp.eq.s32.totalorder %v254_v30, %v262_v31  ;;  %vm297_vm3 = vcmp.lt.s32.totalorder %v289_v29, 200 }
  0x98   : > { %vm302_vm15 = vmand %vm267_vm5, %vm294_vm7  ;;  %v491_v38 = vsel %vm301_vm14, 1.0, %v801_v32  ;;  %v324_v39 = vadd.f32 %v490_v35, %v489_v33  ;;  %vm271_vm8 = vcmp.eq.s32.totalorder %v255_v36, %v263_v37  ;;  %vm298_vm2 = vcmp.lt.s32.totalorder %v290_v34, 200 }
  0x99   : > { %vm303_vm1 = vmand %vm268_vm9, %vm295_vm10  ;;  %v492_v40 = vsel %vm302_vm15, 1.0, %v801_v32 }
  0x9a   : > { %vm304_vm4 = vmand %vm269_vm12, %vm296_vm13  ;;  %v325_v41 = vadd.f32 %v491_v38, %v324_v39  ;;  %v493_v42 = vsel %vm303_vm1, 1.0, %v801_v32 }
  0x9b   : > { %vm305_vm6 = vmand %vm270_vm0, %vm297_vm3  ;;  %v494_v44 = vsel %vm304_vm4, 1.0, %v801_v32 }
  0x9c   : > { %v326_v43 = vadd.f32 %v492_v40, %v325_v41  ;;  %vm306_vm11 = vmand %vm271_vm8, %vm298_vm2  ;;  %v495_v46 = vsel %vm305_vm6, 1.0, %v801_v32 }
  0x9d   : > { %v496_v48 = vsel %vm306_vm11, 1.0, %v801_v32 }
  0x9e   : > { %v327_v45 = vadd.f32 %v493_v42, %v326_v43 }
  0xa0   : > { %v328_v47 = vadd.f32 %v494_v44, %v327_v45 }
  0xa2   : > { %v329_v49 = vadd.f32 %v495_v46, %v328_v47  ;;  %336 = sbr.rel (%p497_p7) target bundleno = 193 (0xc1), region = 44 }
  0xa4   : > { %v330_v51 = vadd.f32 %v496_v48, %v329_v49 }
  0xa6   : > { %v331_v52 = vadd.f32 %v330_v51, %v307_v50 }
  0xa8   : > { %332 = vst [vmem:[#allocation2] sm:$0xff] %v331_v52 }
  0xaf   : > { %v337_v53 = vld [vmem:[#allocation2] sm:$0xff] }
  0xb0   : > { %v338_v54 = vrot.slane %v337_v53, 4 }
  0xb2   : > { %v339_v55 = vadd.f32 %v338_v54, %v337_v53 }
  0xb4   : > { %v340_v56 = vrot.slane %v339_v55, 2 }
  0xb6   : > { %v341_v57 = vadd.f32 %v340_v56, %v339_v55 }
  0xb8   : > { %v342_v58 = vrot.slane %v341_v57, 1 }
  0xba   : > { %v343_v59 = vadd.f32 %v342_v58, %v341_v57 }
  0xbc   : > { %v344_v60 = vmul.f32 0.005, %v343_v59 }
  0xbe   : > { %v345_v61 = vsub.f32 1.0, %v344_v60 }
  0xc0   : > { %346 = vst [vmem:[%s1025_s27] sm:$0x1] %v345_v61 }
  0xc1 PF: > { %s498_s26 = sshll.u32 %s778_s16, 4  ;;  %s360_s12 = sshll.u32 %s1025_s27, 4  ;;  %s361_s12 = int_to_ptr.vmem [resolvable:$true] %s360_s12 }
  0xc2   : > { %s1058_s7 = scalar_lea.hbm %s1119_s2, %s498_s26  ;;  %s348_s21 = scalar_lea.sflag [#allocation5], %s231_s25 }
  0xc3   : > { %s664_s29 = scalar_lea.vmem %s361_s12, 16  ;;  %p1132_p10 = scmp.ne.s32.totalorder %s1128_s3, 0 }
  0xc4   : > { %p665_p8 = scmp.ne.s32.totalorder %s361_s12, %s664_s29  ;;  %s802_s8 = smov [#allocation8]  }
  0xc5   : > { %s668_s22 = sshll.u32 %s802_s8, 4  ;;  %s669_s22 = int_to_ptr.vmem [resolvable:$false] %s668_s22 }
  0xc6   : > { %p666_p11 = pnand %p665_p8, %p1132_p10  ;;  %s670_s23 = scalar_lea.vmem %s669_s22, 32 }
  0xc7   : > { %p671_p12 = scmp.lt.s32.totalorder %s361_s12, %s669_s22  ;;  %p672_p1 = scmp.lt.s32.totalorder %s670_s23, %s664_s29 }
  0xc8   : > { %p667_p13 = pneg %p666_p11 }
  0xc9   : > { %p673_p5 = por %p672_p1, %p671_p12 }
  0xcb   : > { %p674_p0 = pnand %p673_p5, %p667_p13 }
  0xcd   : > { %677 = shalt.err (!%p674_p0)
}
  0xce   : > { %s678_s16 = scalar_lea.hbm %s1058_s7, 16  ;;  %s682_s0 = scalar_lea.hbm %s1119_s2, 48 }
  0xcf   : > { %p679_p2 = scmp.ne.s32.totalorder %s1058_s7, %s678_s16  ;;  %p683_p6 = scmp.lt.u32.totalorder %s1058_s7, %s1119_s2 }
  0xd0   : > { %p684_p3 = scmp.lt.u32.totalorder %s682_s0, %s678_s16  ;;  %p686_p8 = scmp.lt.u32.totalorder %s678_s16, %s1058_s7 }
  0xd1   : > { %p680_p9 = pnand %p679_p2, %p1132_p10 }
  0xd2   : > { %p685_p7 = por %p684_p3, %p683_p6 }
  0xd3   : > { %p681_p4 = pneg %p680_p9 }
  0xd4   : > { %p687_p11 = por %p686_p8, %p685_p7 }
  0xd6   : > { %p688_p13 = pnand %p687_p11, %p681_p4 }
  0xd8   : > { %691 = shalt.err (!%p688_p13)
}
  0xd9   : > { %505 = dma.vmem_to_hbm [thread:$0]  (%p1132_p10), %s361_s12, 16, %s1058_s7, %s348_s21  }
  0xda PF: > { %p511_p12 = scmp.ge.s32.totalorder %s790_s19, 2  ;;  %s372_s27 = sand.u32 1, %s750_s9  }
  0xdb   : > { %p1133_p1 = scmp.ne.s32.totalorder %s1130_s6, 0  ;;  %s373_s28 = scalar_lea.sflag [#allocation5], %s372_s27 }
  0xdd   : > { %p508_p5 = pnand %p511_p12, %p1133_p1 }
  0xdf   : > { %745 = dma.done.wait (!%p508_p5), %s373_s28, 16  }
  0xe0   : > { %747 = vsyncadd (!%p508_p5), %s373_s28, 4294967280  ;;  %s21_s19 = sadd.s32 1, %s790_s19   ;;  %s1134_s3 = sld [smem:[#allocation14_spill]] }
  0xe1   : > { %p18_p0 = scmp.ge.s32.totalorder %s21_s19, 14   ;;  %s1135_s26 = sld [smem:[#allocation12_spill]] }
  0xe2   : > { %s1136_s30 = sld [smem:[#allocation13_spill]]  ;;  %s1137_s9 = smov %s754_s10 }
  0xe3   : > { %s1138_s10 = smov %s758_s11  ;;  %s1139_s11 = smov %s905_s4 }
  0xe4   : > { %s1140_s12 = smov %s766_s13  ;;  %s1141_s13 = smov %s770_s14 }
  0xe5   : > { %s1143_s15 = smov %s782_s17  ;;  %s1144_s16 = smov %s786_s18 }
  0xe6   : > { %s1142_s14 = smov %s1134_s3  ;;  %20 = sbr.rel (!%p18_p0) target bundleno = 13 (0xd), region = 94 }
  0xe7   : > { %s1145_s17 = smov %s1135_s26 }
  0xe8   : > { %s1146_s18 = smov %s1136_s30 }
  0xed   :  { %377 = vsyncpa [#allocation4], 1 }
  0xee   :  { %379 = vsyncpa [#allocation4 + $0x1], 1 }
  0xef   :  { %380 = vsyncpa [#allocation7], 1 }
  0xf0   :  { %382 = vsyncpa [#allocation7 + $0x1], 1 }
  0xf1   :  { %383 = vsyncpa [#allocation5], 1 }
  0xf2   :  { %385 = vsyncpa [#allocation5 + $0x1], 1 }

</bundles_post_ra>
